<compile_context>
chip_gen: v7x
topology: tpu7x:2x2x1
jax: 0.10.0
libtpu: 0.0.40
codegen_flags: <defaults>
</compile_context>

<pallas_src>
import functools

import jax
import jax.numpy as jnp
from jax.experimental import pallas as pl
from jax.experimental.pallas import tpu as pltpu

NUM_FEATURES = 8
NUM_CLASSES = 20
PAD_CLASSES = 32           # padded head width (block == full last dim; 4x less HBM than 128)
BN_EPS = 1e-5
NEG_INF = -1e30            # bias for padded classes: exp underflows to 0, max/lse unaffected


# --------------------------------------------------------------------------------------
# Kernel: one batch tile -> padded logits + per-row NLL
# --------------------------------------------------------------------------------------
def mlp_ce_kernel(
    x_ref, lab_ref,
    w1_ref, b1_ref, w2_ref, b2_ref, w3_ref, b3_ref, w4_ref, b4_ref,
    logits_ref, nll_ref,
):
    x = x_ref[...]

    h = jnp.dot(x, w1_ref[...], preferred_element_type=jnp.float32) + b1_ref[...]
    h = jnp.maximum(h, 0.0)
    h = jnp.dot(h, w2_ref[...], preferred_element_type=jnp.float32) + b2_ref[...]
    h = jnp.maximum(h, 0.0)
    h = jnp.dot(h, w3_ref[...], preferred_element_type=jnp.float32) + b3_ref[...]
    h = jnp.maximum(h, 0.0)
    logits = jnp.dot(h, w4_ref[...], preferred_element_type=jnp.float32) + b4_ref[...]

    logits_ref[...] = logits                        # [TILE_B, 32] f32

    # softmax cross-entropy; padded class columns carry -1e30 bias -> contribute exactly 0
    m = jnp.max(logits, axis=-1, keepdims=True)
    lse = m + jnp.log(jnp.sum(jnp.exp(logits - m), axis=-1, keepdims=True))
    lab = lab_ref[...]                              # [TILE_B, 1] int32
    cls = jax.lax.broadcasted_iota(jnp.int32, logits.shape, 1)
    picked = jnp.sum(jnp.where(cls == lab, logits, 0.0), axis=-1, keepdims=True)
    nll_ref[...] = lse - picked                     # [TILE_B, 1]


# --------------------------------------------------------------------------------------
# Parameter preparation: fold eval-mode BN into the next Linear, pad the head to 32 cols
# --------------------------------------------------------------------------------------
def _fold_bn_into_next_linear(w_next, b_next, gamma, beta, rmean, rvar):
    """BN_eval(h) = h*scale + shift;  BN(h) @ W + b == h @ (diag(scale)@W) + (shift@W + b)."""
    scale = gamma * jax.lax.rsqrt(rvar + BN_EPS)          # [1, C]
    shift = beta - rmean * scale                          # [1, C]
    w_folded = w_next * scale.reshape(-1, 1)              # scale rows of W
    b_folded = b_next + shift @ w_next
    return w_folded, b_folded


def prepare_kernel_params(raw_params):
    """Raw (torch-layout) params -> 8 folded/padded kernel params."""
    (w1, b1, g1, be1, rm1, rv1,
     w2, b2, g2, be2, rm2, rv2,
     w3, b3, g3, be3, rm3, rv3,
     w4, b4) = raw_params
    w2f, b2f = _fold_bn_into_next_linear(w2, b2, g1, be1, rm1, rv1)
    w3f, b3f = _fold_bn_into_next_linear(w3, b3, g2, be2, rm2, rv2)
    w4f, b4f = _fold_bn_into_next_linear(w4, b4, g3, be3, rm3, rv3)
    pad = PAD_CLASSES - NUM_CLASSES
    w4p = jnp.pad(w4f, ((0, 0), (0, pad)))                                     # zero columns
    b4p = jnp.concatenate([b4f, jnp.full((1, pad), NEG_INF, jnp.float32)], 1)  # -inf-ish bias
    return (w1, b1, w2f, b2f, w3f, b3f, w4p, b4p)


# --------------------------------------------------------------------------------------
# Wrapper: batch-tiled pallas_call (no input padding; ragged last tile handled by Pallas)
# --------------------------------------------------------------------------------------
def _round_up(n, m):
    return ((n + m - 1) // m) * m


@functools.partial(jax.jit, static_argnames=("tile_b",))
def fingerprint_forward(x, labels, kernel_params, tile_b=4096):
    """x: [B, 8] f32, labels: [B] int -> (logits_padded [B, 32] f32, loss scalar f32).

    logits_padded[:, :NUM_CLASSES] are the real logits; callers slice lazily so the
    padded columns never cost an extra HBM pass inside this function.
    """
    B = x.shape[0]
    tile_b = max(8, min(tile_b, _round_up(B, 8)))
    # v7x megacore: keep >= 2 grid steps for batches >= 16 so the "parallel" batch
    # axis can be sharded across both TensorCores instead of idling one.
    if B >= 16 and -(-B // tile_b) < 2:
        tile_b = _round_up(-(-B // 2), 8)
    num_tiles = pl.cdiv(B, tile_b)

    labels2d = labels.astype(jnp.int32).reshape(B, 1)
    (w1, b1, w2, b2, w3, b3, w4, b4) = kernel_params

    const = lambda shape: pl.BlockSpec(shape, lambda i: (0, 0))   # resident across tiles
    tiled = lambda shape: pl.BlockSpec(shape, lambda i: (i, 0))   # streamed per tile

    logits_pad, nll = pl.pallas_call(
        mlp_ce_kernel,
        grid=(num_tiles,),
        in_specs=[
            tiled((tile_b, NUM_FEATURES)),
            tiled((tile_b, 1)),
            const(w1.shape), const(b1.shape),
            const(w2.shape), const(b2.shape),
            const(w3.shape), const(b3.shape),
            const(w4.shape), const(b4.shape),
        ],
        out_specs=(
            tiled((tile_b, PAD_CLASSES)),
            tiled((tile_b, 1)),
        ),
        out_shape=(
            jax.ShapeDtypeStruct((B, PAD_CLASSES), jnp.float32),
            jax.ShapeDtypeStruct((B, 1), jnp.float32),
        ),
        compiler_params=pltpu.CompilerParams(dimension_semantics=("parallel",)),
    )(x, labels2d, w1, b1, w2, b2, w3, b3, w4, b4)

    # Out-of-bounds rows of a ragged last tile are never written back, so nll has exactly
    # B valid rows; the mean is a trivial reduce over them.
    loss = jnp.sum(nll) / B
    return logits_pad, loss


# --------------------------------------------------------------------------------------
# Reference / init (mirrors the PyTorch module's shapes and eval-mode defaults)
# --------------------------------------------------------------------------------------
def init_raw_params(key):
    """Linear weights stored [in, out] (transposed vs torch); BN uses PyTorch defaults."""
    dims = [(NUM_FEATURES, 64), (64, 32), (32, 16), (16, NUM_CLASSES)]
    keys = jax.random.split(key, len(dims) * 2)
    params = []
    for idx, (fan_in, fan_out) in enumerate(dims):
        bound = 1.0 / float(fan_in) ** 0.5
        w = jax.random.uniform(keys[2 * idx], (fan_in, fan_out), jnp.float32, -bound, bound)
        b = jax.random.uniform(keys[2 * idx + 1], (1, fan_out), jnp.float32, -bound, bound)
        params += [w, b]
        if idx < 3:  # BN follows the first three linears
            params += [jnp.ones((1, fan_out), jnp.float32),   # gamma
                       jnp.zeros((1, fan_out), jnp.float32),  # beta
                       jnp.zeros((1, fan_out), jnp.float32),  # running_mean
                       jnp.ones((1, fan_out), jnp.float32)]   # running_var
    return tuple(params)


def reference_forward(x, labels, raw_params):
    (w1, b1, g1, be1, rm1, rv1,
     w2, b2, g2, be2, rm2, rv2,
     w3, b3, g3, be3, rm3, rv3,
     w4, b4) = raw_params

    def bn(h, g, be, rm, rv):
        return (h - rm) * jax.lax.rsqrt(rv + BN_EPS) * g + be

    h = bn(jnp.maximum(x @ w1 + b1, 0.0), g1, be1, rm1, rv1)
    h = bn(jnp.maximum(h @ w2 + b2, 0.0), g2, be2, rm2, rv2)
    h = bn(jnp.maximum(h @ w3 + b3, 0.0), g3, be3, rm3, rv3)
    logits = h @ w4 + b4
    logp = jax.nn.log_softmax(logits, axis=-1)
    loss = -jnp.mean(jnp.take_along_axis(logp, labels[:, None], axis=-1))
    return logits, loss


if __name__ == "__main__":
    key = jax.random.PRNGKey(0)
    k_param, k_x, k_lab = jax.random.split(key, 3)

    B = 10  # deliberately not a multiple of 8: exercises the ragged (no-jnp.pad) path
    x = jax.random.normal(k_x, (B, NUM_FEATURES), jnp.float32)
    labels = jax.random.randint(k_lab, (B,), 0, NUM_CLASSES, dtype=jnp.int32)

    raw_params = init_raw_params(k_param)
    kernel_params = prepare_kernel_params(raw_params)

    logits_pad, loss = fingerprint_forward(x, labels, kernel_params)
    jax.block_until_ready((logits_pad, loss))

    logits = logits_pad[:, :NUM_CLASSES]          # consumer-side lazy slice of the padded head
    ref_logits, ref_loss = reference_forward(x, labels, raw_params)

    assert logits.shape == (B, NUM_CLASSES)
    assert loss.shape == ()
    assert bool(jnp.isfinite(loss))
    assert bool(jnp.allclose(logits, ref_logits, rtol=1e-4, atol=1e-4))
    assert bool(jnp.allclose(loss, ref_loss, rtol=1e-4, atol=1e-4))
    print("KERNEL_OK")
</pallas_src>

<mosaic_0001>
module attributes {stable_mosaic.version = 11 : i64} {
  func.func @mlp_ce_kernel(%arg0: i32, %arg1: memref<16x8xf32, #tpu.memory_space<vmem>>, %arg2: memref<16x1xi32, #tpu.memory_space<vmem>>, %arg3: memref<8x64xf32, #tpu.memory_space<vmem>>, %arg4: memref<1x64xf32, #tpu.memory_space<vmem>>, %arg5: memref<64x32xf32, #tpu.memory_space<vmem>>, %arg6: memref<1x32xf32, #tpu.memory_space<vmem>>, %arg7: memref<32x16xf32, #tpu.memory_space<vmem>>, %arg8: memref<1x16xf32, #tpu.memory_space<vmem>>, %arg9: memref<16x32xf32, #tpu.memory_space<vmem>>, %arg10: memref<1x32xf32, #tpu.memory_space<vmem>>, %arg11: memref<16x32xf32, #tpu.memory_space<vmem>>, %arg12: memref<16x1xf32, #tpu.memory_space<vmem>>) attributes {dimension_semantics = [#tpu.dimension_semantics<parallel>], iteration_bounds = array<i64: 1>, scalar_prefetch = 0 : i64, scratch_operands = 0 : i64, tpu.core_type = #tpu.core_type<tc>, window_params = [{transform_indices = @transform_0, window_bounds = array<i64: 16, 8>}, {transform_indices = @transform_1, window_bounds = array<i64: 16, 1>}, {pipeline_mode = #tpu.pipeline_mode<synchronous>, transform_indices = @transform_2, window_bounds = array<i64: 8, 64>}, {pipeline_mode = #tpu.pipeline_mode<synchronous>, transform_indices = @transform_3, window_bounds = array<i64: 1, 64>}, {pipeline_mode = #tpu.pipeline_mode<synchronous>, transform_indices = @transform_4, window_bounds = array<i64: 64, 32>}, {pipeline_mode = #tpu.pipeline_mode<synchronous>, transform_indices = @transform_5, window_bounds = array<i64: 1, 32>}, {pipeline_mode = #tpu.pipeline_mode<synchronous>, transform_indices = @transform_6, window_bounds = array<i64: 32, 16>}, {pipeline_mode = #tpu.pipeline_mode<synchronous>, transform_indices = @transform_7, window_bounds = array<i64: 1, 16>}, {pipeline_mode = #tpu.pipeline_mode<synchronous>, transform_indices = @transform_8, window_bounds = array<i64: 16, 32>}, {pipeline_mode = #tpu.pipeline_mode<synchronous>, transform_indices = @transform_9, window_bounds = array<i64: 1, 32>}, {transform_indices = @transform_10, window_bounds = array<i64: 16, 32>}, {transform_indices = @transform_11, window_bounds = array<i64: 16, 1>}]} {
    %c0 = arith.constant 0 : index
    %c0_0 = arith.constant 0 : index
    %0 = vector.load %arg1[%c0, %c0_0] : memref<16x8xf32, #tpu.memory_space<vmem>>, vector<16x8xf32>
    %c0_1 = arith.constant 0 : index
    %c0_2 = arith.constant 0 : index
    %1 = vector.load %arg3[%c0_1, %c0_2] : memref<8x64xf32, #tpu.memory_space<vmem>>, vector<8x64xf32>
    %cst = arith.constant dense<0.000000e+00> : vector<16x64xf32>
    %2 = tpu.matmul %0, %1, %cst {dimension_numbers = #tpu.dot_dimension_numbers<[1], [0], [0], [1], [0, 0, 1, 1], [], []>} : vector<16x8xf32>, vector<8x64xf32>, vector<16x64xf32> -> vector<16x64xf32>
    %c0_3 = arith.constant 0 : index
    %c0_4 = arith.constant 0 : index
    %3 = vector.load %arg4[%c0_3, %c0_4] : memref<1x64xf32, #tpu.memory_space<vmem>>, vector<1x64xf32>
    %4 = vector.broadcast %3 : vector<1x64xf32> to vector<16x64xf32>
    %5 = arith.addf %2, %4 : vector<16x64xf32>
    %cst_5 = arith.constant 0.000000e+00 : f32
    %6 = vector.broadcast %cst_5 : f32 to vector<16x64xf32>
    %7 = arith.maximumf %5, %6 : vector<16x64xf32>
    %c0_6 = arith.constant 0 : index
    %c0_7 = arith.constant 0 : index
    %8 = vector.load %arg5[%c0_6, %c0_7] : memref<64x32xf32, #tpu.memory_space<vmem>>, vector<64x32xf32>
    %cst_8 = arith.constant dense<0.000000e+00> : vector<16x32xf32>
    %9 = tpu.matmul %7, %8, %cst_8 {dimension_numbers = #tpu.dot_dimension_numbers<[1], [0], [0], [1], [0, 0, 1, 1], [], []>} : vector<16x64xf32>, vector<64x32xf32>, vector<16x32xf32> -> vector<16x32xf32>
    %c0_9 = arith.constant 0 : index
    %c0_10 = arith.constant 0 : index
    %10 = vector.load %arg6[%c0_9, %c0_10] : memref<1x32xf32, #tpu.memory_space<vmem>>, vector<1x32xf32>
    %11 = vector.broadcast %10 : vector<1x32xf32> to vector<16x32xf32>
    %12 = arith.addf %9, %11 : vector<16x32xf32>
    %cst_11 = arith.constant 0.000000e+00 : f32
    %13 = vector.broadcast %cst_11 : f32 to vector<16x32xf32>
    %14 = arith.maximumf %12, %13 : vector<16x32xf32>
    %c0_12 = arith.constant 0 : index
    %c0_13 = arith.constant 0 : index
    %15 = vector.load %arg7[%c0_12, %c0_13] : memref<32x16xf32, #tpu.memory_space<vmem>>, vector<32x16xf32>
    %cst_14 = arith.constant dense<0.000000e+00> : vector<16x16xf32>
    %16 = tpu.matmul %14, %15, %cst_14 {dimension_numbers = #tpu.dot_dimension_numbers<[1], [0], [0], [1], [0, 0, 1, 1], [], []>} : vector<16x32xf32>, vector<32x16xf32>, vector<16x16xf32> -> vector<16x16xf32>
    %c0_15 = arith.constant 0 : index
    %c0_16 = arith.constant 0 : index
    %17 = vector.load %arg8[%c0_15, %c0_16] : memref<1x16xf32, #tpu.memory_space<vmem>>, vector<1x16xf32>
    %18 = vector.broadcast %17 : vector<1x16xf32> to vector<16x16xf32>
    %19 = arith.addf %16, %18 : vector<16x16xf32>
    %cst_17 = arith.constant 0.000000e+00 : f32
    %20 = vector.broadcast %cst_17 : f32 to vector<16x16xf32>
    %21 = arith.maximumf %19, %20 : vector<16x16xf32>
    %c0_18 = arith.constant 0 : index
    %c0_19 = arith.constant 0 : index
    %22 = vector.load %arg9[%c0_18, %c0_19] : memref<16x32xf32, #tpu.memory_space<vmem>>, vector<16x32xf32>
    %cst_20 = arith.constant dense<0.000000e+00> : vector<16x32xf32>
    %23 = tpu.matmul %21, %22, %cst_20 {dimension_numbers = #tpu.dot_dimension_numbers<[1], [0], [0], [1], [0, 0, 1, 1], [], []>} : vector<16x16xf32>, vector<16x32xf32>, vector<16x32xf32> -> vector<16x32xf32>
    %c0_21 = arith.constant 0 : index
    %c0_22 = arith.constant 0 : index
    %24 = vector.load %arg10[%c0_21, %c0_22] : memref<1x32xf32, #tpu.memory_space<vmem>>, vector<1x32xf32>
    %25 = vector.broadcast %24 : vector<1x32xf32> to vector<16x32xf32>
    %26 = arith.addf %23, %25 : vector<16x32xf32>
    %c0_23 = arith.constant 0 : index
    %c0_24 = arith.constant 0 : index
    %27 = vector.load %arg11[%c0_23, %c0_24] : memref<16x32xf32, #tpu.memory_space<vmem>>, vector<16x32xf32>
    tpu.vector_store %arg11[%c0_23, %c0_24], %26 {strides = array<i32>} : memref<16x32xf32, #tpu.memory_space<vmem>>, vector<16x32xf32>,
    %cst_25 = arith.constant dense<0xFF800000> : vector<16xf32>
    %28 = vector.multi_reduction <maximumf>, %26, %cst_25 [1] : vector<16x32xf32> to vector<16xf32>
    %29 = vector.shape_cast %28 : vector<16xf32> to vector<16x1xf32>
    %30 = vector.broadcast %29 : vector<16x1xf32> to vector<16x32xf32>
    %31 = arith.subf %26, %30 : vector<16x32xf32>
    %32 = math.exp %31 : vector<16x32xf32>
    %cst_26 = arith.constant dense<0.000000e+00> : vector<16xf32>
    %33 = vector.multi_reduction <add>, %32, %cst_26 [1] : vector<16x32xf32> to vector<16xf32>
    %34 = vector.shape_cast %33 : vector<16xf32> to vector<16x1xf32>
    %35 = math.log %34 : vector<16x1xf32>
    %36 = arith.addf %29, %35 : vector<16x1xf32>
    %c0_27 = arith.constant 0 : index
    %c0_28 = arith.constant 0 : index
    %37 = vector.load %arg2[%c0_27, %c0_28] : memref<16x1xi32, #tpu.memory_space<vmem>>, vector<16x1xi32>
    %38 = tpu.iota {dimensions = array<i32: 1>} : vector<16x32xi32>
    %39 = vector.broadcast %37 : vector<16x1xi32> to vector<16x32xi32>
    %40 = arith.cmpi eq, %38, %39 : vector<16x32xi32>
    %cst_29 = arith.constant 0.000000e+00 : f32
    %41 = vector.broadcast %cst_29 : f32 to vector<16x32xf32>
    %42 = arith.select %40, %26, %41 : vector<16x32xi1>, vector<16x32xf32>
    %cst_30 = arith.constant dense<0.000000e+00> : vector<16xf32>
    %43 = vector.multi_reduction <add>, %42, %cst_30 [1] : vector<16x32xf32> to vector<16xf32>
    %44 = vector.shape_cast %43 : vector<16xf32> to vector<16x1xf32>
    %45 = arith.subf %36, %44 : vector<16x1xf32>
    %c0_31 = arith.constant 0 : index
    %c0_32 = arith.constant 0 : index
    %46 = vector.load %arg12[%c0_31, %c0_32] : memref<16x1xf32, #tpu.memory_space<vmem>>, vector<16x1xf32>
    tpu.vector_store %arg12[%c0_31, %c0_32], %45 {strides = array<i32>} : memref<16x1xf32, #tpu.memory_space<vmem>>, vector<16x1xf32>,
    return
  }
  func.func @transform_0(%arg0: i32) -> (i32, i32) {
    %c0_i32 = arith.constant 0 : i32
    %c0_i32_0 = arith.constant 0 : i32
    return %arg0, %c0_i32 : i32, i32
  }
  func.func @transform_1(%arg0: i32) -> (i32, i32) {
    %c0_i32 = arith.constant 0 : i32
    %c0_i32_0 = arith.constant 0 : i32
    return %arg0, %c0_i32 : i32, i32
  }
  func.func @transform_2(%arg0: i32) -> (i32, i32) {
    %c0_i32 = arith.constant 0 : i32
    %c0_i32_0 = arith.constant 0 : i32
    %c0_i32_1 = arith.constant 0 : i32
    return %c0_i32, %c0_i32_0 : i32, i32
  }
  func.func @transform_3(%arg0: i32) -> (i32, i32) {
    %c0_i32 = arith.constant 0 : i32
    %c0_i32_0 = arith.constant 0 : i32
    %c0_i32_1 = arith.constant 0 : i32
    return %c0_i32, %c0_i32_0 : i32, i32
  }
  func.func @transform_4(%arg0: i32) -> (i32, i32) {
    %c0_i32 = arith.constant 0 : i32
    %c0_i32_0 = arith.constant 0 : i32
    %c0_i32_1 = arith.constant 0 : i32
    return %c0_i32, %c0_i32_0 : i32, i32
  }
  func.func @transform_5(%arg0: i32) -> (i32, i32) {
    %c0_i32 = arith.constant 0 : i32
    %c0_i32_0 = arith.constant 0 : i32
    %c0_i32_1 = arith.constant 0 : i32
    return %c0_i32, %c0_i32_0 : i32, i32
  }
  func.func @transform_6(%arg0: i32) -> (i32, i32) {
    %c0_i32 = arith.constant 0 : i32
    %c0_i32_0 = arith.constant 0 : i32
    %c0_i32_1 = arith.constant 0 : i32
    return %c0_i32, %c0_i32_0 : i32, i32
  }
  func.func @transform_7(%arg0: i32) -> (i32, i32) {
    %c0_i32 = arith.constant 0 : i32
    %c0_i32_0 = arith.constant 0 : i32
    %c0_i32_1 = arith.constant 0 : i32
    return %c0_i32, %c0_i32_0 : i32, i32
  }
  func.func @transform_8(%arg0: i32) -> (i32, i32) {
    %c0_i32 = arith.constant 0 : i32
    %c0_i32_0 = arith.constant 0 : i32
    %c0_i32_1 = arith.constant 0 : i32
    return %c0_i32, %c0_i32_0 : i32, i32
  }
  func.func @transform_9(%arg0: i32) -> (i32, i32) {
    %c0_i32 = arith.constant 0 : i32
    %c0_i32_0 = arith.constant 0 : i32
    %c0_i32_1 = arith.constant 0 : i32
    return %c0_i32, %c0_i32_0 : i32, i32
  }
  func.func @transform_10(%arg0: i32) -> (i32, i32) {
    %c0_i32 = arith.constant 0 : i32
    %c0_i32_0 = arith.constant 0 : i32
    return %arg0, %c0_i32 : i32, i32
  }
  func.func @transform_11(%arg0: i32) -> (i32, i32) {
    %c0_i32 = arith.constant 0 : i32
    %c0_i32_0 = arith.constant 0 : i32
    return %arg0, %c0_i32 : i32, i32
  }
}

</mosaic_0001>

<bundles_post_ra>
// kernel: fingerprint_forward.1
= control target key start
LH: loop header
LB: loop body
LE: loop exit
PB: predicated region body
PF: predicated region fallthrough
CT: control target
= control target key end

     0   :  { %vm48_vm0 = vcmask 64512   ;;  %s792_s0 = inlined_call_operand.vmem [shape: f32[10,8], index: 0, kind: input, shape index: {}]   ;;  %s793_s1 = inlined_call_operand.vmem [shape: s32[10,1], index: 1, kind: input, shape index: {}]   ;;  %s794_s2 = inlined_call_operand.vmem [shape: f32[8,64], index: 2, kind: input, shape index: {}]   ;;  %s795_s3 = inlined_call_operand.vmem [shape: f32[1,64], index: 3, kind: input, shape index: {}]   ;;  %s796_s4 = inlined_call_operand.vmem [shape: f32[64,32], index: 4, kind: input, shape index: {}]   ;;  %s797_s5 = inlined_call_operand.vmem [shape: f32[1,32], index: 5, kind: input, shape index: {}]   ;;  %s798_s6 = inlined_call_operand.vmem [shape: f32[32,16], index: 6, kind: input, shape index: {}]   ;;  %s799_s7 = inlined_call_operand.vmem [shape: f32[1,16], index: 7, kind: input, shape index: {}]   ;;  %s800_s8 = inlined_call_operand.vmem [shape: f32[16,32], index: 8, kind: input, shape index: {}]   ;;  %s801_s9 = inlined_call_operand.vmem [shape: f32[1,32], index: 9, kind: input, shape index: {}]   ;;  %s802_s10 = inlined_call_operand.hbm [shape: f32[10,32], index: 10, kind: output, shape index: {0}]   ;;  %s803_s11 = inlined_call_operand.vmem [shape: f32[10,1], index: 11, kind: output, shape index: {1}]  }
   0x1   :  { %v40_v0 = vld [vmem:[%s794_s2] sm:$0xff]  ;;  %v39_v2 = vld [vmem:[%s792_s0 + $0x8] sm:$0xff]  ;;  %v134_v5 = vld [vmem:[%s796_s4 + $0x10] sm:$0xff] }
   0x2   :  { %v38_v1 = vld [vmem:[%s792_s0] sm:$0xff]  ;;  %523 = vmatprep.subr.mxu0 %v40_v0  ;;  %v133_v4 = vld [vmem:[%s796_s4 + $0x8] sm:$0xff]  ;;  %v135_v7 = vld [vmem:[%s796_s4 + $0x18] sm:$0xff] }
   0x3   :  { %525 = vmatprep.mubr.msk.f32.mxu0 %vm48_vm0, %v38_v1  ;;  %v132_v3 = vld [vmem:[%s796_s4] sm:$0xff]  ;;  %524 = vmatpush3.msra.mxu0 %v40_v0  ;;  %v569_v8 = vpack.c.bf16 %v135_v7, %v134_v5  ;;  %v137_v10 = vld [vmem:[%s796_s4 + $0x28] sm:$0xff] }
   0x4   :  { %v565_v6 = vpack.c.bf16 %v133_v4, %v132_v3  ;;  %526 = vmatmul.mubr.msk.f32.vlgmr.msra.gmra.mrb[0].mxu0 %vm48_vm0, %v39_v2  ;;  %v136_v9 = vld [vmem:[%s796_s4 + $0x20] sm:$0xff] }
   0x5   :  { %17 = vsyncpa [#allocation3], 0  ;;  %v573_v11 = vpack.c.bf16 %v137_v10, %v136_v9  ;;  %v138_v12 = vld [vmem:[%s796_s4 + $0x30] sm:$0xff]  ;;  %v139_v13 = vld [vmem:[%s796_s4 + $0x38] sm:$0xff]  ;;  %vm147_vm1 = vcmask 523264   ;;  %vm242_vm2 = vcmask 261120   ;;  %v445_v60 = vlaneseq }
   0x6   :  { %566 = vmatprep.subr.bf16.mxu1 %v565_v6  ;;  %v577_v14 = vpack.c.bf16 %v139_v13, %v138_v12  ;;  %v231_v15 = vld [vmem:[%s798_s6] sm:$0xff]  ;;  %v232_v16 = vld [vmem:[%s798_s6 + $0x8] sm:$0xff]  ;;  %v233_v25 = vld [vmem:[%s798_s6 + $0x10] sm:$0xff]  ;;  %v631_v39 = vmov 0   ;;  %vm335_vm3 = vcmask 130048  }
   0x7   :  { %568 = vmatpush3.bf16.msra.mxu1 %v565_v6  ;;  %v581_v17 = vpack.c.bf16 %v232_v16, %v231_v15  ;;  %v488_v18 = vld [vmem:[%s795_s3] ss:$0 sm:$0xff]  ;;  %v234_v26 = vld [vmem:[%s798_s6 + $0x18] sm:$0xff]  ;;  %v327_v36 = vld [vmem:[%s800_s8 + $0x8] sm:$0xff]  ;;  %597 = vset.pattern.permute.xlu1 %v631_v39  ;;  %v446_v63 = vand.u32 127, %v445_v60 }
   0x8   :  { %570 = vmatprep.subr.bf16.mxu1 %v569_v8  ;;  %v585_v27 = vpack.c.bf16 %v234_v26, %v233_v25  ;;  %v491_v28 = vld [vmem:[%s797_s5] ss:$0 sm:$0xff]  ;;  %598 = vset.pattern.permute.xlu0 %v631_v39  ;;  %v444_v40 = vld [vmem:[%s793_s1 + $0x8] sm:$0xff] }
   0x9   :  { %582 = vmatprep.subr.bf16.mxu0 %v581_v17  ;;  %v326_v35 = vld [vmem:[%s800_s8] sm:$0xff] }
   0xa   :  { %584 = vmatpush3.bf16.msra.mxu0 %v581_v17  ;;  %v589_v37 = vpack.c.bf16 %v327_v36, %v326_v35  ;;  %v443_v38 = vld [vmem:[%s793_s1] sm:$0xff]  ;;  %s632_s1 = smov [#allocation2]  }
   0xb   :  { %572 = vmatpush3.bf16.msra.mxu1 %v569_v8  ;;  %586 = vmatprep.subr.bf16.mxu0 %v585_v27  ;;  %v494_v41 = vld [vmem:[%s799_s7] ss:$0 sm:$0xff]  ;;  %s473_s7 = sshll.u32 %s632_s1, 4  ;;  %s474_s7 = int_to_ptr.vmem [resolvable:$true] %s473_s7 }
   0xc   :  { %574 = vmatprep.subr.bf16.mxu1 %v573_v11  ;;  %448 = vperm.xlu1 %597, %v443_v38   ;;  %v497_v48 = vld [vmem:[%s801_s9] ss:$0 sm:$0xff]  ;;  %s607_s9 = scalar_lea.vmem %s474_s7, 256  ;;  %p612_p1 = scmp.lt.s32.totalorder %s474_s7, %s474_s7 }
   0xd   :  { %p608_p0 = scmp.ne.s32.totalorder %s474_s7, %s607_s9  ;;  %p613_p2 = scmp.lt.s32.totalorder %s607_s9, %s607_s9 }
   0xe   :  { %588 = vmatpush3.bf16.msra.mxu0 %v585_v27 }
   0xf   :  { %576 = vmatpush3.bf16.msra.mxu1 %v573_v11  ;;  %590 = vmatprep.subr.bf16.mxu0 %v589_v37  ;;  %p614_p3 = por %p613_p2, %p612_p1 }
  0x10   :  { %578 = vmatprep.subr.bf16.mxu1 %v577_v14  ;;  %451 = vperm.xlu1 %597, %v444_v40  }
  0x11   :  { %p615_p4 = pnand %p614_p3, %p608_p0 }
  0x13   :  { %580 = vmatpush3.bf16.msra.mxu1 %v577_v14 }
  0x8b   :  { %v449_v62 = vpop.permute.xlu1 %448 }
  0x8c   :  { %vm453_vm4 = vcmp.eq.s32.totalorder %v446_v63, %v449_v62 }
  0x8f   :  { %v452_v1 = vpop.permute.xlu1 %451 }
  0x90   :  { %vm454_vm5 = vcmp.eq.s32.totalorder %v446_v63, %v452_v1 }
  0xd7   :  { %v527_v19 = vpop.f32.mrb[0].mxu0 }
  0xd8   :  { %v127_v20 = vadd.f32 %v527_v19, %v488_v18  ;;  %v121_v21 = vpop.f32.mrb[1].mxu0 }
  0xd9   :  { %v122_v22 = vadd.f32 %v488_v18, %v121_v21 }
  0xda   :  { %v131_v24 = vmax.f32 %v127_v20, 0.0 }
  0xdb   :  { %v130_v23 = vmax.f32 %v122_v22, 0.0 }
  0xdd   :  { %544 = vmatprep.mubr.msk.f32.mxu1 %vm147_vm1, %v130_v23 }
  0xde   :  { %545 = vmatmul.mubr.msk.f32.vlgmr.msra.gmra.mrb[0].mxu1 %vm147_vm1, %v131_v24 }
 0x1b1   :  { %v546_v29 = vpop.f32.mrb[0].mxu1 }
 0x1b2   :  { %v226_v30 = vadd.f32 %v546_v29, %v491_v28  ;;  %v220_v31 = vpop.f32.mrb[1].mxu1 }
 0x1b3   :  { %v221_v32 = vadd.f32 %v491_v28, %v220_v31 }
 0x1b4   :  { %v230_v34 = vmax.f32 %v226_v30, 0.0 }
 0x1b5   :  { %v229_v33 = vmax.f32 %v221_v32, 0.0 }
 0x1b7   :  { %555 = vmatprep.mubr.msk.f32.mxu0 %vm242_vm2, %v229_v33 }
 0x1b8   :  { %556 = vmatmul.mubr.msk.f32.vlgmr.msra.gmra.mrb[2].mxu0 %vm242_vm2, %v230_v34 }
 0x1b9   :  { %592 = vmatpush3.bf16.msra.mxu0 %v589_v37 }
 0x28b   :  { %v557_v42 = vpop.f32.mrb[2].mxu0 }
 0x28c   :  { %v321_v43 = vadd.f32 %v557_v42, %v494_v41  ;;  %v315_v44 = vpop.f32.mrb[3].mxu0 }
 0x28d   :  { %v316_v45 = vadd.f32 %v494_v41, %v315_v44 }
 0x28e   :  { %v325_v47 = vmax.f32 %v321_v43, 0.0 }
 0x28f   :  { %v324_v46 = vmax.f32 %v316_v45, 0.0 }
 0x291   :  { %562 = vmatprep.mubr.msk.f32.mxu0 %vm335_vm3, %v324_v46 }
 0x292   :  { %563 = vmatmul.mubr.msk.f32.vlgmr.msra.gmra.mrb[4].mxu0 %vm335_vm3, %v325_v47 }
 0x365   :  { %v564_v49 = vpop.f32.mrb[4].mxu0 }
 0x366   :  { %v414_v50 = vadd.f32 %v564_v49, %v497_v48  ;;  %v408_v51 = vpop.f32.mrb[5].mxu0 }
 0x367   :  { %v409_v52 = vadd.f32 %v497_v48, %v408_v51 }
 0x368   :  { %418 = vst.msk [vmem:[#allocation2 + $0x8] sm:$0xff] %vm242_vm2, %v414_v50  ;;  %v422_v54 = vsel %vm242_vm2, %v414_v50, -inf  ;;  %v456_v7 = vsel %vm454_vm5, %v414_v50, 0.0 }
 0x369   :  { %417 = vst.msk [vmem:[#allocation2] sm:$0xff] %vm242_vm2, %v409_v52  ;;  %v419_v53 = vsel %vm242_vm2, %v409_v52, -inf  ;;  %v455_v3 = vsel %vm453_vm4, %v409_v52, 0.0  ;;  %v460_v8 = vsel %vm242_vm2, %v456_v7, 0.0 }
 0x36a   :  { %420 = vmax.xlane.f32.xlu0 %v419_v53  ;;  %v457_v5 = vsel %vm242_vm2, %v455_v3, 0.0 }
 0x36e   :  { %423 = vmax.xlane.f32.xlu0 %v422_v54 }
 0x3f7   :  { %v421_v55 = vpop.xlane.xlu0 %420 }
 0x3f8   :  { %v425_v56 = vsub.f32 %v409_v52, %v421_v55 }
 0x3fa   :  { %v427_v57 = vmul.f32 1.442695, %v425_v56 }
 0x3fb   :  { %v424_v58 = vpop.xlane.xlu0 %423 }
 0x3fc   :  { %599 = vpow2.f32 %v427_v57  ;;  %v426_v59 = vsub.f32 %v414_v50, %v424_v58 }
 0x3fe   :  { %v429_v61 = vmul.f32 1.442695, %v426_v59 }
 0x400   :  { %601 = vpow2.f32 %v429_v61 }
 0x406   :  { %v600_v0 = vpop.eup %599 }
 0x407   :  { %v431_v2 = vsel %vm242_vm2, %v600_v0, 0.0 }
 0x408   :  { %432 = vadd.xlane.f32.xlu0 %v431_v2 }
 0x40a   :  { %v602_v4 = vpop.eup %601 }
 0x40b   :  { %v434_v6 = vsel %vm242_vm2, %v602_v4, 0.0 }
 0x40c   :  { %458 = vadd.xlane.f32.xlu0 %v457_v5  ;;  %435 = vadd.xlane.f32.xlu1 %v434_v6 }
 0x410   :  { %461 = vadd.xlane.f32.xlu0 %v460_v8 }
 0x411   :  { %618 = shalt.err (!%p615_p4)
}
 0x412   :  { %s619_s18 = scalar_lea.hbm %s802_s10, 256 }
 0x413   :  { %p620_p5 = scmp.ne.s32.totalorder %s802_s10, %s619_s18  ;;  %p623_p6 = scmp.lt.u32.totalorder %s619_s18, %s802_s10 }
 0x415   :  { %p625_p7 = pnand %p623_p6, %p620_p5 }
 0x417   :  { %628 = shalt.err (!%p625_p7)
}
 0x418   :  { %s633_s23 = smov 128   ;;  %s634_s4 = smov 8   ;;  %vm465_vm6 = vcmask 7168  }
 0x419   :  { %479 = dma.vmem_to_hbm [thread:$0]  %s474_s7, 256, %s802_s10, [#allocation3], %s633_s23, %s633_s23, %s634_s4  }
 0x495   :  { %v433_v9 = vpop.xlane.xlu0 %432 }
 0x496   :  { %603 = vlog2.f32 %v433_v9 }
 0x499   :  { %v436_v10 = vpop.xlane.xlu1 %435  ;;  %v459_v13 = vpop.xlane.xlu0 %458 }
 0x49a   :  { %605 = vlog2.f32 %v436_v10 }
 0x49d   :  { %v462_v19 = vpop.xlane.xlu0 %461 }
 0x4a0   :  { %v604_v11 = vpop.eup %603 }
 0x4a1   :  { %v438_v12 = vmul.f32 0.6931472, %v604_v11 }
 0x4a3   :  { %v441_v14 = vadd.f32 %v438_v12, %v421_v55 }
 0x4a4   :  { %v606_v15 = vpop.eup %605 }
 0x4a5   :  { %v440_v16 = vmul.f32 0.6931472, %v606_v15  ;;  %v463_v17 = vsub.f32 %v441_v14, %v459_v13 }
 0x4a7   :  { %466 = vst.msk [vmem:[%s803_s11] sm:$0xff] %vm465_vm6, %v463_v17  ;;  %v442_v18 = vadd.f32 %v440_v16, %v424_v58 }
 0x4a9   :  { %v464_v20 = vsub.f32 %v442_v18, %v462_v19 }
 0x4ab   :  { %467 = vst.msk [vmem:[%s803_s11 + $0x8] sm:$0xff] %vm465_vm6, %v464_v20 }
 0x4ac   :  { %629 = dma.done.wait [#allocation3], 256  }
 0x4ad   :  { %630 = vsyncadd [#allocation3], 4294967040 }
 0x4ae   :  { %487 = vsyncpa [#allocation3], 1 }

</bundles_post_ra>
